<compile_context>
chip_gen: v7x
topology: tpu7x:2x2x1
jax: 0.10.0
libtpu: 0.0.40
codegen_flags: <defaults>
</compile_context>

<pallas_src>
import functools

import jax
import jax.numpy as jnp
from jax.experimental import pallas as pl
from jax.experimental.pallas import tpu as pltpu

EPS = 1e-5
_VMEM_HEADROOM = 14 * 1024 * 1024   # room for Mosaic internal scratch
_DEFAULT_VMEM = 64 * 1024 * 1024    # conservative fallback (v7x per-core VMEM)


def _round_up(n, m):
    return ((n + m - 1) // m) * m


def _pad2d(a, rows, cols):
    pr, pc = rows - a.shape[0], cols - a.shape[1]
    if pr or pc:
        a = jnp.pad(a, ((0, pr), (0, pc)))
    return a


@functools.cache
def _vmem_limit_bytes():
    """Scoped-VMEM limit: physical capacity minus headroom (v5e/v6e ~114 MiB,
    v7x ~50 MiB); conservative constant if the query is unavailable."""
    try:
        cap = getattr(pltpu.get_tpu_info(), "vmem_capacity_bytes", None)
    except Exception:
        cap = None
    cap = cap or _DEFAULT_VMEM
    return int(max(cap - _VMEM_HEADROOM, 32 * 1024 * 1024))


@functools.cache
def _pipeline_mode_supported():
    """One-time probe: does BlockSpec(pipeline_mode=pl.Buffered(n)) compile?
    Used for single-buffered resident activations / deeper weight buffering;
    falls back to default double-buffering when unsupported."""
    if not hasattr(pl, "Buffered"):
        return False

    def _copy(x_ref, o_ref):
        o_ref[...] = x_ref[...]

    try:
        out = pl.pallas_call(
            _copy,
            out_shape=jax.ShapeDtypeStruct((8, 128), jnp.float32),
            grid=(1,),
            in_specs=[pl.BlockSpec((8, 128), lambda i: (0, 0),
                                   pipeline_mode=pl.Buffered(1))],
            out_specs=pl.BlockSpec((8, 128), lambda i: (0, 0)),
        )(jnp.zeros((8, 128), jnp.float32))
        jax.block_until_ready(out)
        return True
    except Exception:
        return False


def _spec(block_shape, index_map, buffers=None):
    if buffers is not None and _pipeline_mode_supported():
        return pl.BlockSpec(block_shape, index_map,
                            pipeline_mode=pl.Buffered(buffers))
    return pl.BlockSpec(block_shape, index_map)


def _pick_n_tile(n):
    # Prefer wide (lane-dense, >= 2x MXU width) output panels; the pl.cdiv grid
    # masks a ragged last tile, so dims like 640 don't degrade to tn=128.
    for t in (512, 256, 128):
        if n >= t:
            return t
    return n


def _pick_k_tile(kp, bp, tn, out_itemsize, budget):
    # K tiles must divide Kp exactly: a ragged K tile would fold unspecified
    # padding into the accumulation. Kp is padded to a multiple of 128.
    for tk in range(kp, 0, -128):
        if kp % tk:
            continue
        need = (2 * bp * tk * 2               # double-buffered bf16 LHS panels
                + 2 * tk * tn * 2             # double-buffered bf16 weight panels
                + 2 * bp * tn * out_itemsize  # double-buffered output tiles
                + bp * tn * 4)                # f32 accumulator scratch
        if need <= budget:
            return tk
    return 128


# ---------------------------------------------------------------------------
# Kernels
# ---------------------------------------------------------------------------

def _bn_relu_epilogue(h, gamma, beta, b_real, has_pad_rows):
    # Single-pass moments: valid because padded batch rows of `h` are exactly
    # zero (padded inputs are zero and every stage re-zeroes its padded rows),
    # so the column sums only see the real batch.
    inv_b = 1.0 / float(b_real)
    mean = jnp.sum(h, axis=0, keepdims=True) * inv_b
    mean_sq = jnp.sum(h * h, axis=0, keepdims=True) * inv_b
    var = jnp.maximum(mean_sq - mean * mean, 0.0)   # guard mild cancellation
    scale = gamma * jax.lax.rsqrt(var + EPS)        # rsqrt -> EUP
    shift = beta - mean * scale
    act = jnp.maximum(h * scale + shift, 0.0)
    if has_pad_rows:
        rows = jax.lax.broadcasted_iota(jnp.int32, (act.shape[0], 1), 0)
        act = jnp.where(rows < b_real, act, 0.0)    # keep padded rows at zero
    return act


def _linear_bn_relu_kernel(x_ref, w_ref, g_ref, be_ref, o_ref, *, b_real, b_pad):
    # Resident-activation fast path: full (Bp, Kp) x stays in VMEM, one bf16
    # weight column-panel streamed per grid step.
    h = jnp.dot(x_ref[...], w_ref[...], preferred_element_type=jnp.float32)
    act = _bn_relu_epilogue(h, g_ref[...], be_ref[...], b_real, b_pad != b_real)
    o_ref[...] = act.astype(o_ref.dtype)


def _linear_bn_relu_acc_kernel(x_ref, w_ref, g_ref, be_ref, o_ref, acc_ref, *,
                               b_real, b_pad):
    # K-tiled fallback: f32 accumulator in VMEM, BN epilogue on the last K step.
    k = pl.program_id(1)

    @pl.when(k == 0)
    def _():
        acc_ref[...] = jnp.zeros_like(acc_ref)

    acc_ref[...] += jnp.dot(x_ref[...], w_ref[...],
                            preferred_element_type=jnp.float32)

    @pl.when(k == pl.num_programs(1) - 1)
    def _():
        act = _bn_relu_epilogue(acc_ref[...], g_ref[...], be_ref[...],
                                b_real, b_pad != b_real)
        o_ref[...] = act.astype(o_ref.dtype)


def _linear_bias_kernel(x_ref, w_ref, b_ref, o_ref):
    h = jnp.dot(x_ref[...], w_ref[...], preferred_element_type=jnp.float32)
    o_ref[...] = (h + b_ref[...]).astype(o_ref.dtype)


# ---------------------------------------------------------------------------
# Stage wrappers (one fused pallas_call per stage)
# ---------------------------------------------------------------------------

def _linear_bn_relu_stage(x_p, w_p, gamma, beta, *, b_real,
                          out_dtype=jnp.bfloat16, max_resident_bytes=None):
    Bp, Kp = x_p.shape
    Np = w_p.shape[1]
    tn = _pick_n_tile(Np)
    n_tiles = pl.cdiv(Np, tn)
    out_isz = jnp.dtype(out_dtype).itemsize
    vmem_limit = _vmem_limit_bytes()
    budget = (int(max_resident_bytes) if max_resident_bytes is not None
              else (vmem_limit * 3) // 4)
    pm_ok = _pipeline_mode_supported()

    act_bufs = 1 if pm_ok else 2
    w_bufs = 3 if (pm_ok and Bp <= 256 and n_tiles >= 3) else 2

    def _resident_need(wb):
        return act_bufs * Bp * Kp * 2 + wb * Kp * tn * 2 + 2 * Bp * tn * out_isz

    if w_bufs == 3 and _resident_need(3) > budget:
        w_bufs = 2

    cost = pl.CostEstimate(
        flops=2 * Bp * Kp * Np, transcendentals=int(Np),
        bytes_accessed=int(x_p.size * x_p.dtype.itemsize
                           + w_p.size * w_p.dtype.itemsize
                           + (gamma.size + beta.size) * 4 + Bp * Np * out_isz))

    def _cparams(dims):
        return pltpu.CompilerParams(dimension_semantics=dims,
                                    vmem_limit_bytes=vmem_limit)

    out_shape = jax.ShapeDtypeStruct((Bp, Np), out_dtype)

    if _resident_need(w_bufs) <= budget:
        # Fast path: x fetched once and VMEM-resident (single-buffered); bf16
        # weight column-panels streamed over the N grid, overlapped with the
        # MXU by the BlockSpec pipeline.
        kernel = functools.partial(_linear_bn_relu_kernel,
                                   b_real=b_real, b_pad=Bp)
        return pl.pallas_call(
            kernel, out_shape=out_shape,
            grid_spec=pltpu.PrefetchScalarGridSpec(
                num_scalar_prefetch=0, grid=(n_tiles,),
                in_specs=[
                    _spec((Bp, Kp), lambda j: (0, 0), buffers=1),
                    _spec((Kp, tn), lambda j: (0, j),
                          buffers=w_bufs if w_bufs != 2 else None),
                    pl.BlockSpec((1, tn), lambda j: (0, j)),
                    pl.BlockSpec((1, tn), lambda j: (0, j)),
                ],
                out_specs=pl.BlockSpec((Bp, tn), lambda j: (0, j)),
            ),
            compiler_params=_cparams(("parallel",)),
            cost_estimate=cost,
        )(x_p, w_p, gamma, beta)

    # Fallback (e.g. v7x's 64 MiB/core VMEM with large B*H): tile the
    # contraction dim with an f32 VMEM accumulator.
    kernel = functools.partial(_linear_bn_relu_acc_kernel,
                               b_real=b_real, b_pad=Bp)
    tk = _pick_k_tile(Kp, Bp, tn, out_isz, budget)
    return pl.pallas_call(
        kernel, out_shape=out_shape,
        grid_spec=pltpu.PrefetchScalarGridSpec(
            num_scalar_prefetch=0, grid=(n_tiles, Kp // tk),
            in_specs=[
                pl.BlockSpec((Bp, tk), lambda j, k: (0, k)),
                pl.BlockSpec((tk, tn), lambda j, k: (k, j)),
                pl.BlockSpec((1, tn), lambda j, k: (0, j)),
                pl.BlockSpec((1, tn), lambda j, k: (0, j)),
            ],
            out_specs=pl.BlockSpec((Bp, tn), lambda j, k: (0, j)),
            scratch_shapes=[pltpu.VMEM((Bp, tn), jnp.float32)],
        ),
        compiler_params=_cparams(("parallel", "arbitrary")),
        cost_estimate=cost,
    )(x_p, w_p, gamma, beta)


def _linear_bias_stage(x_p, w_p, bias, *, out_dtype=jnp.float32):
    Bp, Kp = x_p.shape
    Np = w_p.shape[1]
    tn = _pick_n_tile(Np)
    # Tile the batch too so both v7x TensorCores contribute even when the
    # output dim yields only 1-2 N tiles. The (tm, Kp) LHS block stays small
    # for a projection head, so no K tiling is needed on this stage.
    tm = Bp if Bp <= 128 else 128
    grid = (pl.cdiv(Bp, tm), pl.cdiv(Np, tn))
    out_isz = jnp.dtype(out_dtype).itemsize
    cost = pl.CostEstimate(
        flops=2 * Bp * Kp * Np, transcendentals=0,
        bytes_accessed=int(x_p.size * x_p.dtype.itemsize
                           + w_p.size * w_p.dtype.itemsize
                           + bias.size * 4 + Bp * Np * out_isz))
    return pl.pallas_call(
        _linear_bias_kernel,
        out_shape=jax.ShapeDtypeStruct((Bp, Np), out_dtype),
        grid_spec=pltpu.PrefetchScalarGridSpec(
            num_scalar_prefetch=0, grid=grid,
            in_specs=[
                pl.BlockSpec((tm, Kp), lambda i, j: (i, 0)),
                pl.BlockSpec((Kp, tn), lambda i, j: (0, j)),
                pl.BlockSpec((1, tn), lambda i, j: (0, j)),
            ],
            out_specs=pl.BlockSpec((tm, tn), lambda i, j: (i, j)),
        ),
        compiler_params=pltpu.CompilerParams(
            dimension_semantics=("parallel", "parallel"),
            vmem_limit_bytes=_vmem_limit_bytes()),
        cost_estimate=cost,
    )(x_p, w_p, bias)


# ---------------------------------------------------------------------------
# Parameter prep + forward pass
# ---------------------------------------------------------------------------

def prepare_params(params, weight_dtype=jnp.bfloat16):
    """One-time parameter prep (run OUTSIDE the hot forward path): pad feature
    dims to multiples of 128 (lane-dense tiles) and cast weights to bf16 so
    every forward reads exactly the weight bytes the kernels consume."""
    H = params["w1"].shape[0]
    O = params["w3"].shape[1]
    Hp, Op = _round_up(H, 128), _round_up(O, 128)
    f32 = jnp.float32
    return dict(
        hidden_dim=H, output_dim=O,
        w1=_pad2d(params["w1"], Hp, Hp).astype(weight_dtype),
        w2=_pad2d(params["w2"], Hp, Hp).astype(weight_dtype),
        w3=_pad2d(params["w3"], Hp, Op).astype(weight_dtype),
        g1=_pad2d(params["g1"].astype(f32), 1, Hp),
        beta1=_pad2d(params["beta1"].astype(f32), 1, Hp),
        g2=_pad2d(params["g2"].astype(f32), 1, Hp),
        beta2=_pad2d(params["beta2"].astype(f32), 1, Hp),
        b3=_pad2d(params["b3"].astype(f32), 1, Op),
    )


def projection_head(x, prepared, *, max_resident_bytes=None):
    """ProjectionHead forward (batch_norm=True, BN in training mode).

    x: (B, hidden_dim) float32. `prepared`: output of prepare_params().
    `max_resident_bytes` overrides the VMEM budget used to choose between the
    resident-activation fast path and the K-tiled fallback (mainly for tests).

    NOTE: params b1/b2 are intentionally unused -- a bias added right before
    training-mode BatchNorm is cancelled exactly by the mean subtraction.
    """
    B, H = x.shape
    assert H == int(prepared["hidden_dim"]), "input width != hidden_dim"
    out_dim = int(prepared["output_dim"])
    Hp = prepared["w1"].shape[0]

    Bp = _round_up(B, 16)                        # bf16 sublane packing
    x_p = _pad2d(x, Bp, Hp).astype(jnp.bfloat16)

    h = _linear_bn_relu_stage(x_p, prepared["w1"], prepared["g1"],
                              prepared["beta1"], b_real=B,
                              max_resident_bytes=max_resident_bytes)
    h = _linear_bn_relu_stage(h, prepared["w2"], prepared["g2"],
                              prepared["beta2"], b_real=B,
                              max_resident_bytes=max_resident_bytes)
    y = _linear_bias_stage(h, prepared["w3"], prepared["b3"])
    return y[:B, :out_dim]


def init_params(key, hidden_dim, output_dim, last_layer_bias=True):
    """PyTorch-Linear-style init: U(-1/sqrt(fan_in), 1/sqrt(fan_in)).
    Weights stored as (in, out) for x @ W. BN gamma=1, beta=0."""
    keys = jax.random.split(key, 6)

    def linear(kw, kb, fan_in, fan_out):
        bound = 1.0 / jnp.sqrt(float(fan_in))
        w = jax.random.uniform(kw, (fan_in, fan_out), jnp.float32, -bound, bound)
        b = jax.random.uniform(kb, (1, fan_out), jnp.float32, -bound, bound)
        return w, b

    w1, b1 = linear(keys[0], keys[1], hidden_dim, hidden_dim)
    w2, b2 = linear(keys[2], keys[3], hidden_dim, hidden_dim)
    w3, b3 = linear(keys[4], keys[5], hidden_dim, output_dim)
    if not last_layer_bias:
        b3 = jnp.zeros_like(b3)

    return dict(
        w1=w1, b1=b1, g1=jnp.ones((1, hidden_dim), jnp.float32),
        beta1=jnp.zeros((1, hidden_dim), jnp.float32),
        w2=w2, b2=b2, g2=jnp.ones((1, hidden_dim), jnp.float32),
        beta2=jnp.zeros((1, hidden_dim), jnp.float32),
        w3=w3, b3=b3,
    )


def _reference(x, p):
    """Pure-JAX reference with the same bf16-in / f32-accumulate matmul
    numerics. Includes b1/b2 to show they are cancelled by training-mode BN."""
    def mm(a, w):
        return jnp.dot(a.astype(jnp.bfloat16), w.astype(jnp.bfloat16),
                       preferred_element_type=jnp.float32)

    def bn_relu(h, g, be):
        m = h.mean(axis=0, keepdims=True)
        v = ((h - m) ** 2).mean(axis=0, keepdims=True)
        return jnp.maximum((h - m) * jax.lax.rsqrt(v + EPS) * g + be, 0.0)

    h = bn_relu(mm(x, p["w1"]) + p["b1"], p["g1"], p["beta1"])
    h = bn_relu(mm(h, p["w2"]) + p["b2"], p["g2"], p["beta2"])
    return mm(h, p["w3"]) + p["b3"]


if __name__ == "__main__":
    def check(batch, hidden_dim, output_dim, tol, max_resident_bytes=None):
        key = jax.random.PRNGKey(0)
        kx, kp = jax.random.split(key)
        x = jax.random.normal(kx, (batch, hidden_dim), jnp.float32)
        params = init_params(kp, hidden_dim, output_dim)
        prepared = prepare_params(params)   # one-time, outside the hot path

        out = projection_head(x, prepared,
                              max_resident_bytes=max_resident_bytes)
        jax.block_until_ready(out)

        ref = _reference(x, params)
        assert out.shape == (batch, output_dim)
        err = float(jnp.max(jnp.abs(out - ref)))
        assert jnp.allclose(out, ref, atol=tol, rtol=tol), (
            f"mismatch at B={batch} H={hidden_dim} O={output_dim}: "
            f"max abs err {err}")

    # Small shape: feature/batch padding + zeroed padded batch rows.
    check(batch=8, hidden_dim=32, output_dim=32, tol=2e-2)
    # Wide panels with a ragged (masked) last N tile on the resident fast path.
    check(batch=16, hidden_dim=640, output_dim=256, tol=2e-2)
    # Force the K-tiled fallback (v7x-style VMEM pressure) + M-tiled last stage.
    check(batch=160, hidden_dim=256, output_dim=128, tol=2e-2,
          max_resident_bytes=16 * 1024)

    print("KERNEL_OK")
</pallas_src>

<mosaic_0001>
module attributes {stable_mosaic.version = 11 : i64} {
  func.func @_copy(%arg0: i32, %arg1: memref<8x128xf32, #tpu.memory_space<vmem>>, %arg2: memref<8x128xf32, #tpu.memory_space<vmem>>) attributes {dimension_semantics = [#tpu.dimension_semantics<arbitrary>], iteration_bounds = array<i64: 1>, scalar_prefetch = 0 : i64, scratch_operands = 0 : i64, tpu.core_type = #tpu.core_type<tc>, window_params = [{pipeline_mode = #tpu.pipeline_mode<synchronous>, transform_indices = @transform_0, window_bounds = array<i64: 8, 128>}, {pipeline_mode = #tpu.pipeline_mode<synchronous>, transform_indices = @transform_1, window_bounds = array<i64: 8, 128>}]} {
    %c0 = arith.constant 0 : index
    %c0_0 = arith.constant 0 : index
    %0 = vector.load %arg1[%c0, %c0_0] : memref<8x128xf32, #tpu.memory_space<vmem>>, vector<8x128xf32>
    %c0_1 = arith.constant 0 : index
    %c0_2 = arith.constant 0 : index
    %1 = vector.load %arg2[%c0_1, %c0_2] : memref<8x128xf32, #tpu.memory_space<vmem>>, vector<8x128xf32>
    tpu.vector_store %arg2[%c0_1, %c0_2], %0 {strides = array<i32>} : memref<8x128xf32, #tpu.memory_space<vmem>>, vector<8x128xf32>,
    return
  }
  func.func @transform_0(%arg0: i32) -> (i32, i32) {
    %c0_i32 = arith.constant 0 : i32
    %c0_i32_0 = arith.constant 0 : i32
    %c0_i32_1 = arith.constant 0 : i32
    return %c0_i32, %c0_i32_0 : i32, i32
  }
  func.func @transform_1(%arg0: i32) -> (i32, i32) {
    %c0_i32 = arith.constant 0 : i32
    %c0_i32_0 = arith.constant 0 : i32
    %c0_i32_1 = arith.constant 0 : i32
    return %c0_i32, %c0_i32_0 : i32, i32
  }
}

module attributes {stable_mosaic.version = 11 : i64} {
  func.func @_linear_bn_relu_kernel(%arg0: i32, %arg1: memref<16x128xbf16, #tpu.memory_space<vmem>>, %arg2: memref<128x128xbf16, #tpu.memory_space<vmem>>, %arg3: memref<1x128xf32, #tpu.memory_space<vmem>>, %arg4: memref<1x128xf32, #tpu.memory_space<vmem>>, %arg5: memref<16x128xbf16, #tpu.memory_space<vmem>>) attributes {dimension_semantics = [#tpu.dimension_semantics<parallel>], iteration_bounds = array<i64: 1>, scalar_prefetch = 0 : i64, scratch_operands = 0 : i64, tpu.core_type = #tpu.core_type<tc>, window_params = [{pipeline_mode = #tpu.pipeline_mode<synchronous>, transform_indices = @transform_0, window_bounds = array<i64: 16, 128>}, {transform_indices = @transform_1, window_bounds = array<i64: 128, 128>}, {transform_indices = @transform_2, window_bounds = array<i64: 1, 128>}, {transform_indices = @transform_3, window_bounds = array<i64: 1, 128>}, {transform_indices = @transform_4, window_bounds = array<i64: 16, 128>}]} {
    %c0 = arith.constant 0 : index
    %c0_0 = arith.constant 0 : index
    %0 = vector.load %arg1[%c0, %c0_0] : memref<16x128xbf16, #tpu.memory_space<vmem>>, vector<16x128xbf16>
    %c0_1 = arith.constant 0 : index
    %c0_2 = arith.constant 0 : index
    %1 = vector.load %arg2[%c0_1, %c0_2] : memref<128x128xbf16, #tpu.memory_space<vmem>>, vector<128x128xbf16>
    %cst = arith.constant dense<0.000000e+00> : vector<16x128xf32>
    %2 = tpu.matmul %0, %1, %cst {dimension_numbers = #tpu.dot_dimension_numbers<[1], [0], [0], [1], [0, 0, 1, 1], [], []>} : vector<16x128xbf16>, vector<128x128xbf16>, vector<16x128xf32> -> vector<16x128xf32>
    %c0_3 = arith.constant 0 : index
    %c0_4 = arith.constant 0 : index
    %3 = vector.load %arg3[%c0_3, %c0_4] : memref<1x128xf32, #tpu.memory_space<vmem>>, vector<1x128xf32>
    %c0_5 = arith.constant 0 : index
    %c0_6 = arith.constant 0 : index
    %4 = vector.load %arg4[%c0_5, %c0_6] : memref<1x128xf32, #tpu.memory_space<vmem>>, vector<1x128xf32>
    %cst_7 = arith.constant dense<0.000000e+00> : vector<128xf32>
    %5 = vector.multi_reduction <add>, %2, %cst_7 [0] : vector<16x128xf32> to vector<128xf32>
    %6 = vector.shape_cast %5 : vector<128xf32> to vector<1x128xf32>
    %cst_8 = arith.constant 1.250000e-01 : f32
    %7 = vector.broadcast %cst_8 : f32 to vector<1x128xf32>
    %8 = arith.mulf %6, %7 : vector<1x128xf32>
    %9 = arith.mulf %2, %2 : vector<16x128xf32>
    %cst_9 = arith.constant dense<0.000000e+00> : vector<128xf32>
    %10 = vector.multi_reduction <add>, %9, %cst_9 [0] : vector<16x128xf32> to vector<128xf32>
    %11 = vector.shape_cast %10 : vector<128xf32> to vector<1x128xf32>
    %cst_10 = arith.constant 1.250000e-01 : f32
    %12 = vector.broadcast %cst_10 : f32 to vector<1x128xf32>
    %13 = arith.mulf %11, %12 : vector<1x128xf32>
    %14 = arith.mulf %8, %8 : vector<1x128xf32>
    %15 = arith.subf %13, %14 : vector<1x128xf32>
    %cst_11 = arith.constant 0.000000e+00 : f32
    %16 = vector.broadcast %cst_11 : f32 to vector<1x128xf32>
    %17 = arith.maximumf %15, %16 : vector<1x128xf32>
    %cst_12 = arith.constant 9.99999974E-6 : f32
    %18 = vector.broadcast %cst_12 : f32 to vector<1x128xf32>
    %19 = arith.addf %17, %18 : vector<1x128xf32>
    %20 = math.rsqrt %19 : vector<1x128xf32>
    %21 = arith.mulf %3, %20 : vector<1x128xf32>
    %22 = arith.mulf %8, %21 : vector<1x128xf32>
    %23 = arith.subf %4, %22 : vector<1x128xf32>
    %24 = vector.broadcast %21 : vector<1x128xf32> to vector<16x128xf32>
    %25 = arith.mulf %2, %24 : vector<16x128xf32>
    %26 = vector.broadcast %23 : vector<1x128xf32> to vector<16x128xf32>
    %27 = arith.addf %25, %26 : vector<16x128xf32>
    %cst_13 = arith.constant 0.000000e+00 : f32
    %28 = vector.broadcast %cst_13 : f32 to vector<16x128xf32>
    %29 = arith.maximumf %27, %28 : vector<16x128xf32>
    %30 = tpu.iota {dimensions = array<i32: 0>} : vector<16x1xi32>
    %c8_i32 = arith.constant 8 : i32
    %31 = vector.broadcast %c8_i32 : i32 to vector<16x1xi32>
    %32 = arith.cmpi slt, %30, %31 : vector<16x1xi32>
    %cst_14 = arith.constant 0.000000e+00 : f32
    %33 = vector.shape_cast %32 : vector<16x1xi1> to vector<16x1xi1>
    %34 = vector.broadcast %33 : vector<16x1xi1> to vector<16x128xi1>
    %35 = vector.broadcast %cst_14 : f32 to vector<16x128xf32>
    %36 = arith.select %34, %29, %35 : vector<16x128xi1>, vector<16x128xf32>
    %37 = arith.truncf %36 : vector<16x128xf32> to vector<16x128xbf16>
    %c0_15 = arith.constant 0 : index
    %c0_16 = arith.constant 0 : index
    %38 = vector.load %arg5[%c0_15, %c0_16] : memref<16x128xbf16, #tpu.memory_space<vmem>>, vector<16x128xbf16>
    tpu.vector_store %arg5[%c0_15, %c0_16], %37 {strides = array<i32>} : memref<16x128xbf16, #tpu.memory_space<vmem>>, vector<16x128xbf16>,
    return
  }
  func.func @transform_0(%arg0: i32) -> (i32, i32) {
    %c0_i32 = arith.constant 0 : i32
    %c0_i32_0 = arith.constant 0 : i32
    %c0_i32_1 = arith.constant 0 : i32
    return %c0_i32, %c0_i32_0 : i32, i32
  }
  func.func @transform_1(%arg0: i32) -> (i32, i32) {
    %c0_i32 = arith.constant 0 : i32
    %c0_i32_0 = arith.constant 0 : i32
    return %c0_i32, %arg0 : i32, i32
  }
  func.func @transform_2(%arg0: i32) -> (i32, i32) {
    %c0_i32 = arith.constant 0 : i32
    %c0_i32_0 = arith.constant 0 : i32
    return %c0_i32, %arg0 : i32, i32
  }
  func.func @transform_3(%arg0: i32) -> (i32, i32) {
    %c0_i32 = arith.constant 0 : i32
    %c0_i32_0 = arith.constant 0 : i32
    return %c0_i32, %arg0 : i32, i32
  }
  func.func @transform_4(%arg0: i32) -> (i32, i32) {
    %c0_i32 = arith.constant 0 : i32
    %c0_i32_0 = arith.constant 0 : i32
    return %c0_i32, %arg0 : i32, i32
  }
}

</mosaic_0001>

<bundles_post_ra>
// kernel: tpu_custom_call.1
= control target key start
LH: loop header
LB: loop body
LE: loop exit
PB: predicated region body
PF: predicated region fallthrough
CT: control target
= control target key end

     0   :  { %6 = vsyncpa [#allocation3], 0  ;;  %s124_s0 = inlined_call_operand.hbm [shape: f32[8,128], index: 0, kind: input, shape index: {}]   ;;  %s125_s1 = inlined_call_operand.hbm [shape: f32[8,128], index: 1, kind: output, shape index: {}]  }
   0x1   :  { %7 = vsyncpa [#allocation4], 0  ;;  %s88_s6 = smov [#allocation2]   ;;  %s40_s10 = scalar_lea.hbm %s124_s0, 128 }
   0x2   :  { %s14_s7 = sshll.u32 %s88_s6, 4  ;;  %p41_p0 = scmp.ne.s32.totalorder %s124_s0, %s40_s10  ;;  %s15_s7 = int_to_ptr.vmem [resolvable:$true] %s14_s7 }
   0x3   :  { %p44_p1 = scmp.lt.u32.totalorder %s40_s10, %s124_s0 }
   0x5   :  { %p46_p2 = pnand %p44_p1, %p41_p0 }
   0x7   :  { %49 = shalt.err (!%p46_p2)
}
   0x8   :  { %s50_s15 = scalar_lea.vmem %s15_s7, 128  ;;  %p55_p4 = scmp.lt.s32.totalorder %s15_s7, %s15_s7 }
   0x9   :  { %p51_p3 = scmp.ne.s32.totalorder %s15_s7, %s50_s15  ;;  %p56_p5 = scmp.lt.s32.totalorder %s50_s15, %s50_s15 }
   0xb   :  { %p57_p6 = por %p56_p5, %p55_p4 }
   0xd   :  { %p58_p7 = pnand %p57_p6, %p51_p3 }
   0xf   :  { %61 = shalt.err (!%p58_p7)
}
  0x10   :  { %17 = dma.hbm_to_vmem [thread:$0]  %s124_s0, 128, %s15_s7, [#allocation3]  }
  0x11   :  { %84 = dma.done.wait [#allocation3], 128  }
  0x12   :  { %85 = vsyncadd [#allocation3], 4294967168  ;;  %s89_s18 = smov [#allocation5]   ;;  %v21_v0 = vld [vmem:[#allocation2] sm:$0xff] }
  0x13   :  { %s29_s19 = sshll.u32 %s89_s18, 4  ;;  %22 = vst [vmem:[#allocation5] sm:$0xff] %v21_v0  ;;  %s30_s19 = int_to_ptr.vmem [resolvable:$true] %s29_s19 }
  0x14   :  { %s62_s20 = scalar_lea.vmem %s30_s19, 128  ;;  %p67_p9 = scmp.lt.s32.totalorder %s30_s19, %s30_s19 }
  0x15   :  { %p63_p8 = scmp.ne.s32.totalorder %s30_s19, %s62_s20  ;;  %p68_p10 = scmp.lt.s32.totalorder %s62_s20, %s62_s20 }
  0x17   :  { %p69_p11 = por %p68_p10, %p67_p9 }
  0x19   :  { %p70_p12 = pnand %p69_p11, %p63_p8 }
  0x1b   :  { %73 = shalt.err (!%p70_p12)
}
  0x1c   :  { %s74_s23 = scalar_lea.hbm %s125_s1, 128 }
  0x1d   :  { %p75_p13 = scmp.ne.s32.totalorder %s125_s1, %s74_s23  ;;  %p78_p0 = scmp.lt.u32.totalorder %s74_s23, %s125_s1 }
  0x1f   :  { %p80_p1 = pnand %p78_p0, %p75_p13 }
  0x21   :  { %83 = shalt.err (!%p80_p1)
}
  0x22   :  { %32 = dma.vmem_to_hbm [thread:$0]  %s30_s19, 128, %s125_s1, [#allocation4]  }
  0x23   :  { %86 = dma.done.wait [#allocation4], 128  }
  0x24   :  { %87 = vsyncadd [#allocation4], 4294967168 }
  0x25   :  { %36 = vsyncpa [#allocation3], 1 }
  0x26   :  { %37 = vsyncpa [#allocation4], 1 }

// kernel: tpu_custom_call.1
= control target key start
LH: loop header
LB: loop body
LE: loop exit
PB: predicated region body
PF: predicated region fallthrough
CT: control target
= control target key end

     0   :  { %9 = vsyncpa [#allocation3], 0  ;;  %s474_s0 = inlined_call_operand.hbm [shape: bf16[16,128], index: 0, kind: input, shape index: {}]   ;;  %s475_s1 = inlined_call_operand.hbm [shape: bf16[128,128], index: 1, kind: input, shape index: {}]   ;;  %s476_s2 = inlined_call_operand.vmem [shape: f32[1,128], index: 2, kind: input, shape index: {}]   ;;  %s477_s3 = inlined_call_operand.vmem [shape: f32[1,128], index: 3, kind: input, shape index: {}]   ;;  %s478_s4 = inlined_call_operand.hbm [shape: bf16[16,128], index: 4, kind: output, shape index: {}]  }
   0x1   :  { %10 = vsyncpa [#allocation6], 0 }
   0x2   :  { %11 = vsyncpa [#allocation4], 0  ;;  %s381_s15 = smov [#allocation2]   ;;  %s309_s19 = scalar_lea.hbm %s474_s0, 128 }
   0x3   :  { %s17_s16 = sshll.u32 %s381_s15, 4  ;;  %p310_p0 = scmp.ne.s32.totalorder %s474_s0, %s309_s19  ;;  %s18_s16 = int_to_ptr.vmem [resolvable:$true] %s17_s16 }
   0x4   :  { %p313_p1 = scmp.lt.u32.totalorder %s309_s19, %s474_s0 }
   0x6   :  { %p315_p2 = pnand %p313_p1, %p310_p0 }
   0x8   :  { %318 = shalt.err (!%p315_p2)
}
   0x9   :  { %s319_s24 = scalar_lea.vmem %s18_s16, 128  ;;  %p324_p4 = scmp.lt.s32.totalorder %s18_s16, %s18_s16 }
   0xa   :  { %p320_p3 = scmp.ne.s32.totalorder %s18_s16, %s319_s24  ;;  %p325_p5 = scmp.lt.s32.totalorder %s319_s24, %s319_s24 }
   0xc   :  { %p326_p6 = por %p325_p5, %p324_p4 }
   0xe   :  { %p327_p7 = pnand %p326_p6, %p320_p3 }
  0x10   :  { %330 = shalt.err (!%p327_p7)
}
  0x11   :  { %s382_s25 = smov 64   ;;  %s383_s26 = smov 4  }
  0x12   :  { %23 = dma.hbm_to_vmem [thread:$0]  %s474_s0, 128, %s18_s16, [#allocation3], %s382_s25, %s382_s25, %s383_s26  }
  0x13   :  { %s384_s29 = smov [#allocation5]   ;;  %s331_s7 = scalar_lea.hbm %s475_s1, 1024 }
  0x14   :  { %s29_s30 = sshll.u32 %s384_s29, 4  ;;  %p332_p8 = scmp.ne.s32.totalorder %s475_s1, %s331_s7  ;;  %s30_s30 = int_to_ptr.vmem [resolvable:$true] %s29_s30 }
  0x15   :  { %p335_p9 = scmp.lt.u32.totalorder %s331_s7, %s475_s1 }
  0x17   :  { %p337_p10 = pnand %p335_p9, %p332_p8 }
  0x19   :  { %340 = shalt.err (!%p337_p10)
}
  0x1a   :  { %s341_s12 = scalar_lea.vmem %s30_s30, 1024  ;;  %p346_p12 = scmp.lt.s32.totalorder %s30_s30, %s30_s30 }
  0x1b   :  { %p342_p11 = scmp.ne.s32.totalorder %s30_s30, %s341_s12  ;;  %p347_p13 = scmp.lt.s32.totalorder %s341_s12, %s341_s12 }
  0x1d   :  { %p348_p0 = por %p347_p13, %p346_p12 }
  0x1f   :  { %p349_p1 = pnand %p348_p0, %p342_p11 }
  0x21   :  { %352 = shalt.err (!%p349_p1)
}
  0x22   :  { %35 = dma.hbm_to_vmem [thread:$0]  %s475_s1, 1024, %s30_s30, [#allocation6], %s382_s25, %s382_s25, %s383_s26  }
  0x23   :  { %375 = dma.done.wait [#allocation3], 128  }
  0x24   :  { %376 = vsyncadd [#allocation3], 4294967168 }
  0x25   :  { %377 = dma.done.wait [#allocation6], 1024  }
  0x26   :  { %378 = vsyncadd [#allocation6], 4294966272  ;;  %v385_v0 = vmov 0.0   ;;  %vm386_vm0 = vmmov 0   ;;  %v298_v1 = vld [vmem:[#allocation5] sm:$0xff]   ;;  %v299_v2 = vld [vmem:[#allocation5 + $0x8] sm:$0xff]   ;;  %v189_v36 = vlaneseq }
  0x27   :  { %271 = vmatprep.subr.bf16.mxu0 %v385_v0  ;;  %287 = vmatprep.mubr.msk.bf16.mxu0 %vm386_vm0, %v385_v0  ;;  %v300_v3 = vld [vmem:[#allocation5 + $0x10] sm:$0xff]   ;;  %v301_v4 = vld [vmem:[#allocation5 + $0x18] sm:$0xff]   ;;  %v302_v5 = vld [vmem:[#allocation5 + $0x20] sm:$0xff]   ;;  %s387_s17 = smov [#allocation7]  }
  0x28   :  { %272 = vmatpush3.bf16.msra.mxu0 %v298_v1  ;;  %v303_v6 = vld [vmem:[#allocation5 + $0x28] sm:$0xff]   ;;  %v304_v7 = vld [vmem:[#allocation5 + $0x30] sm:$0xff]   ;;  %v305_v8 = vld [vmem:[#allocation5 + $0x38] sm:$0xff]   ;;  %v190_v37 = vshrl.u32 %v189_v36, 7  ;;  %s232_s18 = sshll.u32 %s387_s17, 4  ;;  %s233_s18 = int_to_ptr.vmem [resolvable:$true] %s232_s18 }
  0x29   :  { %273 = vmatprep.subr.bf16.mxu0 %v385_v0  ;;  %v306_v9 = vld [vmem:[#allocation2] sm:$0xff]   ;;  %p358_p3 = scmp.lt.s32.totalorder %s233_s18, %s233_s18 }
  0x2a   :  { %v160_v38 = vld [vmem:[%s476_s2] sm:$0x1]  ;;  %v191_v39 = vsub.s32 0, %v190_v37  ;;  %s353_s2 = scalar_lea.vmem %s233_s18, 128 }
  0x2b   :  { %v161_v42 = vld [vmem:[%s477_s3] sm:$0x1]  ;;  %p354_p2 = scmp.ne.s32.totalorder %s233_s18, %s353_s2  ;;  %p359_p4 = scmp.lt.s32.totalorder %s353_s2, %s353_s2 }
  0x2c   :  { %274 = vmatpush3.bf16.msra.mxu0 %v299_v2 }
  0x2d   :  { %275 = vmatprep.subr.bf16.mxu0 %v385_v0  ;;  %p360_p5 = por %p359_p4, %p358_p3 }
  0x2f   :  { %p361_p6 = pnand %p360_p5, %p354_p2 }
  0x30   :  { %276 = vmatpush3.bf16.msra.mxu0 %v300_v3 }
  0x31   :  { %277 = vmatprep.subr.bf16.mxu0 %v385_v0 }
  0x34   :  { %278 = vmatpush3.bf16.msra.mxu0 %v301_v4 }
  0x35   :  { %279 = vmatprep.subr.bf16.mxu0 %v385_v0 }
  0x38   :  { %280 = vmatpush3.bf16.msra.mxu0 %v302_v5 }
  0x39   :  { %281 = vmatprep.subr.bf16.mxu0 %v385_v0 }
  0x3c   :  { %282 = vmatpush3.bf16.msra.mxu0 %v303_v6 }
  0x3d   :  { %283 = vmatprep.subr.bf16.mxu0 %v385_v0 }
  0x40   :  { %284 = vmatpush3.bf16.msra.mxu0 %v304_v7 }
  0x41   :  { %285 = vmatprep.subr.bf16.mxu0 %v385_v0 }
  0x44   :  { %286 = vmatpush3.bf16.msra.mxu0 %v305_v8 }
  0x47   :  { %288 = vmatmul.mubr.bf16.vlgmr.msra.gmra.mrb[0].mxu0 %v306_v9 }
 0x11a   :  { %v153_v10 = vpop.f32.mrb[0].mxu0 }
 0x11b   :  { %v289_v11 = vpop.f32.mrb[1].mxu0  ;;  %v170_v13 = vmul.f32 %v153_v10, %v153_v10 }
 0x11c   :  { %v156_v12 = vpop.f32.mrb[2].mxu0 }
 0x11d   :  { %v162_v14 = vadd.f32 %v156_v12, %v153_v10  ;;  %v171_v15 = vmul.f32 %v156_v12, %v156_v12  ;;  %v290_v16 = vpop.f32.mrb[3].mxu0 }
 0x11f   :  { %v163_v17 = vrot.slane %v162_v14, 4  ;;  %v172_v18 = vadd.f32 %v171_v15, %v170_v13 }
 0x121   :  { %v164_v19 = vadd.f32 %v163_v17, %v162_v14  ;;  %v173_v20 = vrot.slane %v172_v18, 4 }
 0x123   :  { %v165_v21 = vrot.slane %v164_v19, 2  ;;  %v174_v22 = vadd.f32 %v173_v20, %v172_v18 }
 0x125   :  { %v166_v23 = vadd.f32 %v165_v21, %v164_v19  ;;  %v175_v24 = vrot.slane %v174_v22, 2 }
 0x127   :  { %v167_v25 = vrot.slane %v166_v23, 1  ;;  %v176_v26 = vadd.f32 %v175_v24, %v174_v22 }
 0x129   :  { %v168_v27 = vadd.f32 %v167_v25, %v166_v23  ;;  %v177_v28 = vrot.slane %v176_v26, 1 }
 0x12b   :  { %v169_v29 = vmul.f32 0.125, %v168_v27  ;;  %v178_v30 = vadd.f32 %v177_v28, %v176_v26 }
 0x12d   :  { %v179_v31 = vmul.f32 0.125, %v178_v30  ;;  %v180_v32 = vmul.f32 %v169_v29, %v169_v29 }
 0x12f   :  { %v181_v33 = vsub.f32 %v179_v31, %v180_v32 }
 0x131   :  { %v182_v34 = vmax.f32 %v181_v33, 0.0 }
 0x133   :  { %v183_v35 = vadd.f32 1e-05, %v182_v34 }
 0x135   :  { %307 = vrsqrt.f32 %v183_v35 }
 0x13f   :  { %v308_v40 = vpop.eup %307 }
 0x140   :  { %v185_v41 = vmul.f32 %v308_v40, %v160_v38 }
 0x142   :  { %v186_v43 = vmul.f32 %v185_v41, %v169_v29  ;;  %v192_v44 = vrot.slane %v185_v41, %v191_v39 }
 0x144   :  { %v187_v45 = vsub.f32 %v161_v42, %v186_v43  ;;  %v194_v46 = vmul.f32 %v192_v44, %v153_v10 }
 0x146   :  { %v200_v47 = vrot.slane %v187_v45, %v191_v39 }
 0x148   :  { %v202_v48 = vadd.f32 %v200_v47, %v194_v46 }
 0x14a   :  { %v204_v49 = vmax.f32 %v202_v48, 0.0 }
 0x14c   :  { %v260_v50 = vpack.c.bf16 %v385_v0, %v204_v49 }
 0x14e   :  { %261 = vst [vmem:[#allocation7] sm:$0xff] %v260_v50  }
 0x14f   :  { %364 = shalt.err (!%p361_p6)
}
 0x150   :  { %s365_s20 = scalar_lea.hbm %s478_s4, 128 }
 0x151   :  { %p366_p7 = scmp.ne.s32.totalorder %s478_s4, %s365_s20  ;;  %p369_p8 = scmp.lt.u32.totalorder %s365_s20, %s478_s4 }
 0x153   :  { %p371_p9 = pnand %p369_p8, %p366_p7 }
 0x155   :  { %374 = shalt.err (!%p371_p9)
}
 0x156   :  { %238 = dma.vmem_to_hbm [thread:$0]  %s233_s18, 128, %s478_s4, [#allocation4], %s382_s25, %s382_s25, %s383_s26  }
 0x157   :  { %379 = dma.done.wait [#allocation4], 128  }
 0x158   :  { %380 = vsyncadd [#allocation4], 4294967168 }
 0x159   :  { %242 = vsyncpa [#allocation3], 1 }
 0x15a   :  { %243 = vsyncpa [#allocation6], 1 }
 0x15b   :  { %244 = vsyncpa [#allocation4], 1 }

</bundles_post_ra>
